<compile_context>
chip_gen: v5e
topology: v5e:2x2
jax: 0.10.0
libtpu: 0.0.40
codegen_flags: <defaults>
</compile_context>

<pallas_src>
import jax
import jax.numpy as jnp
import numpy as np
from jax.experimental import pallas as pl
from jax.experimental.pallas import tpu as pltpu


def _lmc_kernel(inp_ref, tgt_ref, mask_ref, rew_ref, acc_ref):
    k = pl.program_id(1)
    nk = pl.num_programs(1)

    tb, T, tv = inp_ref.shape

    @pl.when(k == 0)
    def _():
        acc_ref[...] = jnp.zeros_like(acc_ref)

    inp = inp_ref[...]                               # (TB, T, TV), native dtype
    # gather(input, dim=2, index=target) restricted to this vocab tile:
    # shift the (TB, T) target by -k*TV instead of adding k*TV to the 3-D iota.
    tgt_local = tgt_ref[...] - k * tv                # (TB, T) i32
    v_iota = jax.lax.broadcasted_iota(jnp.int32, (tb, T, tv), 2)
    eq = v_iota == tgt_local[:, :, None]             # (TB, T, TV) bool

    # At most one match per (b, t) row per vocab tile -> summing selected
    # values in the native dtype (f32 or bf16) is exact; upcast only the tiny
    # per-tile (TB, T) result before accumulating.
    zero = jnp.zeros((), dtype=inp.dtype)
    partial = jnp.sum(jnp.where(eq, inp, zero), axis=2)          # (TB, T)
    acc_ref[...] += partial.astype(jnp.float32)

    @pl.when(k == nk - 1)
    def _():
        # mask is precomputed in plain JAX and resident across the vocab loop.
        rew_ref[...] = jnp.sum(acc_ref[...] * mask_ref[...], axis=1,
                               keepdims=True)                    # (TB, 1)


def _pick_tiles(B, T, V, itemsize, budget_bytes=8 * 1024 * 1024,
                min_batch_tiles=2):
    """Pick (TB, TV), dtype-aware.

    TV first (V is the contiguous HBM dim -> big TV = long DMA bursts and
    lane-dense vregs), then TB as large as fits the per-buffer budget, while
    keeping >= `min_batch_tiles` batch tiles when B allows it (v7x has 2
    TensorCores sharded over the 'parallel' batch axis).
    """
    # TB candidates: multiples of 8 dividing B (descending), else B itself.
    cands = [c for c in (512, 256, 128, 64, 32, 16, 8) if c <= B and B % c == 0]
    if not cands:
        cands = [B]
    capped = [c for c in cands if B // c >= min_batch_tiles]
    if capped:
        cands = capped
    tb_min = cands[-1]

    # TV: largest multiple of 128 dividing V such that even the smallest TB
    # tile fits the budget (or the full, non-128-multiple V as one block).
    if V % 128 == 0:
        tv = 128
        c = V
        while c >= 128:
            if V % c == 0 and tb_min * T * c * itemsize <= budget_bytes:
                tv = c
                break
            c -= 128
    else:
        tv = V

    # TB: biggest candidate whose (TB, T, TV) tile fits the budget.
    tb = tb_min
    for c in cands:
        if c * T * tv * itemsize <= budget_bytes:
            tb = c
            break
    return tb, tv


def language_model_criterion(inp, target, running_baseline=0.0, *, tb=None, tv=None):
    """inp: (B, T, V) log-probs (f32 or bf16), target: (B, T_tgt >= T) int ids.

    Returns (loss_scalar, rewards_minus_baseline, new_running_baseline),
    mirroring the PyTorch module's returned loss + side-effect state.
    """
    B, T, V = inp.shape
    assert target.shape[0] == B and target.shape[1] >= T, (target.shape, (B, T))
    target = target[:, :T].astype(jnp.int32)

    # mask / mask-sum depend only on `target` (tiny) -> plain JAX.
    # mask[i, t] = 1 for t < num_nonzero[i] + 1  (matches the PyTorch module:
    # the '+1' intentionally includes the first padding position).
    nnz = jnp.sum((target > 0).astype(jnp.int32), axis=1, keepdims=True)   # (B,1)
    t_iota = jnp.arange(T, dtype=jnp.int32)[None, :]
    mask = (t_iota < (nnz + 1)).astype(jnp.float32)                        # (B,T)
    msum = jnp.sum(mask)

    itemsize = int(jnp.dtype(inp.dtype).itemsize)
    tb_def, tv_def = _pick_tiles(B, T, V, itemsize)
    tb = tb_def if tb is None else tb
    tv = tv_def if tv is None else tv
    assert B % tb == 0 and V % tv == 0, (B, tb, V, tv)

    grid = (B // tb, V // tv)

    # VMEM limit from the actual working set (+headroom), capped for v7x (64 MiB
    # physical per TC); explicit limit also covers v5e's 16 MiB default scope.
    working = (2 * tb * T * tv * itemsize   # double-buffered input tiles
               + 2 * tb * T * 4             # target (i32)
               + 2 * tb * T * 4             # mask (f32)
               + tb * T * 4                 # f32 accumulator scratch
               + 4 * tb * 4)                # outputs
    vmem_limit = int(min(max(int(working * 1.25) + (1 << 20), 4 << 20), 48 << 20))

    cost = pl.CostEstimate(
        flops=3 * B * T * V,
        transcendentals=0,
        bytes_accessed=B * T * V * itemsize + 2 * B * T * 4 + B * 4,
    )

    rewards = pl.pallas_call(
        _lmc_kernel,
        out_shape=jax.ShapeDtypeStruct((B, 1), jnp.float32),
        grid_spec=pltpu.PrefetchScalarGridSpec(
            num_scalar_prefetch=0,
            grid=grid,
            in_specs=[
                pl.BlockSpec((tb, T, tv), lambda b, k: (b, 0, k)),
                # target / mask ignore the vocab grid index -> resident, no re-DMA
                pl.BlockSpec((tb, T), lambda b, k: (b, 0)),
                pl.BlockSpec((tb, T), lambda b, k: (b, 0)),
            ],
            out_specs=pl.BlockSpec((tb, 1), lambda b, k: (b, 0)),
            scratch_shapes=[pltpu.VMEM((tb, T), jnp.float32)],
        ),
        compiler_params=pltpu.CompilerParams(
            dimension_semantics=("parallel", "arbitrary"),
            vmem_limit_bytes=vmem_limit,
        ),
        cost_estimate=cost,
    )(inp, target, mask)

    rewards = rewards[:, 0]

    # loss = sum(-gathered * mask) / sum(mask)
    loss = -jnp.sum(rewards) / msum

    # side-effect bookkeeping from the PyTorch module (kept in plain JAX)
    model_rewards = rewards - running_baseline
    new_running_baseline = 0.9 * running_baseline + 0.1 * jnp.mean(rewards)
    return loss, model_rewards, new_running_baseline


def _reference(inp, target):
    B, T, V = inp.shape
    target = target[:, :T]
    num_nonzero = (target > 0).sum(axis=1)
    t_iota = np.arange(T)[None, :]
    mask = (t_iota < (num_nonzero[:, None] + 1)).astype(np.float32)
    gathered = np.take_along_axis(inp, target[:, :, None], axis=2)[:, :, 0]
    masked = gathered * mask
    loss = -masked.sum() / mask.sum()
    rewards = masked.sum(axis=1)
    return loss, rewards


if __name__ == "__main__":
    key = jax.random.PRNGKey(0)
    B, T, T_tgt, V = 16, 16, 20, 512  # V = vocab_size + 1

    k1, k2, k3 = jax.random.split(key, 3)
    logits = jax.random.normal(k1, (B, T, V), dtype=jnp.float32)
    log_probs = jax.nn.log_softmax(logits, axis=-1)

    # build targets with per-row lengths so the mask logic is exercised
    lengths = jax.random.randint(k2, (B,), 1, T)
    ids = jax.random.randint(k3, (B, T_tgt), 1, V, dtype=jnp.int32)
    t_idx = jnp.arange(T_tgt)[None, :]
    target = jnp.where(t_idx < lengths[:, None], ids, 0).astype(jnp.int32)

    # forced small tiles: exercises both grid axes (2 batch tiles x 4 vocab tiles)
    loss, rewards, new_rb = language_model_criterion(log_probs, target, 0.0, tb=8, tv=128)
    # default tile-picker path (TV = full V, >=2 batch tiles, single vocab step)
    loss2, rewards2, _ = language_model_criterion(log_probs, target, 0.0)
    jax.block_until_ready((loss, rewards, new_rb, loss2, rewards2))

    ref_loss, ref_rewards = _reference(np.asarray(log_probs), np.asarray(target))
    assert np.allclose(np.asarray(loss), ref_loss, rtol=1e-5, atol=1e-5)
    assert np.allclose(np.asarray(rewards), ref_rewards, rtol=1e-5, atol=1e-5)
    assert np.allclose(np.asarray(loss2), ref_loss, rtol=1e-5, atol=1e-5)
    assert np.allclose(np.asarray(rewards2), ref_rewards, rtol=1e-5, atol=1e-5)

    print("KERNEL_OK")
</pallas_src>

<mosaic_0001>
module attributes {stable_mosaic.version = 11 : i64} {
  func.func @_lmc_kernel(%arg0: i32, %arg1: i32, %arg2: memref<8x16x128xf32, #tpu.memory_space<vmem>>, %arg3: memref<8x16xi32, #tpu.memory_space<vmem>>, %arg4: memref<8x16xf32, #tpu.memory_space<vmem>>, %arg5: memref<8x1xf32, #tpu.memory_space<vmem>>, %arg6: memref<8x16xf32, #tpu.memory_space<vmem>>) attributes {dimension_semantics = [#tpu.dimension_semantics<parallel>, #tpu.dimension_semantics<arbitrary>], iteration_bounds = array<i64: 2, 4>, scalar_prefetch = 0 : i64, scratch_operands = 1 : i64, tpu.core_type = #tpu.core_type<tc>, window_params = [{transform_indices = @transform_0, window_bounds = array<i64: 8, 16, 128>}, {transform_indices = @transform_1, window_bounds = array<i64: 8, 16>}, {transform_indices = @transform_2, window_bounds = array<i64: 8, 16>}, {transform_indices = @transform_3, window_bounds = array<i64: 8, 1>}]} {
    %c0_i32 = arith.constant 0 : i32
    %0 = arith.cmpi eq, %arg1, %c0_i32 : i32
    %1 = arith.extui %0 : i1 to i32
    %c0_i32_0 = arith.constant 0 : i32
    %2 = arith.cmpi ne, %1, %c0_i32_0 : i32
    scf.if %2 {
      %cst_11 = arith.constant 0.000000e+00 : f32
      %21 = vector.broadcast %cst_11 : f32 to vector<8x16xf32>
      %c0_12 = arith.constant 0 : index
      %c0_13 = arith.constant 0 : index
      %22 = vector.load %arg6[%c0_12, %c0_13] : memref<8x16xf32, #tpu.memory_space<vmem>>, vector<8x16xf32>
      tpu.vector_store %arg6[%c0_12, %c0_13], %21 {strides = array<i32>} : memref<8x16xf32, #tpu.memory_space<vmem>>, vector<8x16xf32>,
    } else {
    }
    %c0 = arith.constant 0 : index
    %c0_1 = arith.constant 0 : index
    %c0_2 = arith.constant 0 : index
    %3 = vector.load %arg2[%c0, %c0_1, %c0_2] : memref<8x16x128xf32, #tpu.memory_space<vmem>>, vector<8x16x128xf32>
    %c0_3 = arith.constant 0 : index
    %c0_4 = arith.constant 0 : index
    %4 = vector.load %arg3[%c0_3, %c0_4] : memref<8x16xi32, #tpu.memory_space<vmem>>, vector<8x16xi32>
    %c128_i32 = arith.constant 128 : i32
    %5 = arith.muli %arg1, %c128_i32 : i32
    %6 = vector.broadcast %5 : i32 to vector<8x16xi32>
    %7 = arith.subi %4, %6 : vector<8x16xi32>
    %8 = tpu.iota {dimensions = array<i32: 2>} : vector<8x16x128xi32>
    %9 = vector.shape_cast %7 : vector<8x16xi32> to vector<8x16x1xi32>
    %10 = vector.broadcast %9 : vector<8x16x1xi32> to vector<8x16x128xi32>
    %11 = arith.cmpi eq, %8, %10 : vector<8x16x128xi32>
    %cst = arith.constant 0.000000e+00 : f32
    %12 = vector.broadcast %cst : f32 to vector<8x16x128xf32>
    %13 = arith.select %11, %3, %12 : vector<8x16x128xi1>, vector<8x16x128xf32>
    %cst_5 = arith.constant dense<0.000000e+00> : vector<8x16xf32>
    %14 = vector.multi_reduction <add>, %13, %cst_5 [2] : vector<8x16x128xf32> to vector<8x16xf32>
    %c0_6 = arith.constant 0 : index
    %c0_7 = arith.constant 0 : index
    %15 = vector.load %arg6[%c0_6, %c0_7] : memref<8x16xf32, #tpu.memory_space<vmem>>, vector<8x16xf32>
    %16 = arith.addf %15, %14 : vector<8x16xf32>
    %c0_8 = arith.constant 0 : index
    %c0_9 = arith.constant 0 : index
    %17 = vector.load %arg6[%c0_8, %c0_9] : memref<8x16xf32, #tpu.memory_space<vmem>>, vector<8x16xf32>
    tpu.vector_store %arg6[%c0_8, %c0_9], %16 {strides = array<i32>} : memref<8x16xf32, #tpu.memory_space<vmem>>, vector<8x16xf32>,
    %c3_i32 = arith.constant 3 : i32
    %18 = arith.cmpi eq, %arg1, %c3_i32 : i32
    %19 = arith.extui %18 : i1 to i32
    %c0_i32_10 = arith.constant 0 : i32
    %20 = arith.cmpi ne, %19, %c0_i32_10 : i32
    scf.if %20 {
      %c0_11 = arith.constant 0 : index
      %c0_12 = arith.constant 0 : index
      %21 = vector.load %arg6[%c0_11, %c0_12] : memref<8x16xf32, #tpu.memory_space<vmem>>, vector<8x16xf32>
      %c0_13 = arith.constant 0 : index
      %c0_14 = arith.constant 0 : index
      %22 = vector.load %arg4[%c0_13, %c0_14] : memref<8x16xf32, #tpu.memory_space<vmem>>, vector<8x16xf32>
      %23 = arith.mulf %21, %22 : vector<8x16xf32>
      %cst_15 = arith.constant dense<0.000000e+00> : vector<8xf32>
      %24 = vector.multi_reduction <add>, %23, %cst_15 [1] : vector<8x16xf32> to vector<8xf32>
      %25 = vector.shape_cast %24 : vector<8xf32> to vector<8x1xf32>
      %c0_16 = arith.constant 0 : index
      %c0_17 = arith.constant 0 : index
      %26 = vector.load %arg5[%c0_16, %c0_17] : memref<8x1xf32, #tpu.memory_space<vmem>>, vector<8x1xf32>
      tpu.vector_store %arg5[%c0_16, %c0_17], %25 {strides = array<i32>} : memref<8x1xf32, #tpu.memory_space<vmem>>, vector<8x1xf32>,
    } else {
    }
    return
  }
  func.func @transform_0(%arg0: i32, %arg1: i32) -> (i32, i32, i32) {
    %c0_i32 = arith.constant 0 : i32
    %c0_i32_0 = arith.constant 0 : i32
    return %arg0, %c0_i32, %arg1 : i32, i32, i32
  }
  func.func @transform_1(%arg0: i32, %arg1: i32) -> (i32, i32) {
    %c0_i32 = arith.constant 0 : i32
    %c0_i32_0 = arith.constant 0 : i32
    return %arg0, %c0_i32 : i32, i32
  }
  func.func @transform_2(%arg0: i32, %arg1: i32) -> (i32, i32) {
    %c0_i32 = arith.constant 0 : i32
    %c0_i32_0 = arith.constant 0 : i32
    return %arg0, %c0_i32 : i32, i32
  }
  func.func @transform_3(%arg0: i32, %arg1: i32) -> (i32, i32) {
    %c0_i32 = arith.constant 0 : i32
    %c0_i32_0 = arith.constant 0 : i32
    return %arg0, %c0_i32 : i32, i32
  }
}

</mosaic_0001>

<bundles_post_ra>
// kernel: tpu_custom_call.1
= control target key start
LH: loop header
LB: loop body
LE: loop exit
PB: predicated region body
PF: predicated region fallthrough
CT: control target
= control target key end

     0   :  { %s1302_s0 = inlined_call_operand.hbm [shape: f32[16,16,512], index: 0, kind: input, shape index: {}]   ;;  %s1303_s1 = inlined_call_operand.hbm [shape: s32[16,16], index: 1, kind: input, shape index: {}]   ;;  %s1304_s2 = inlined_call_operand.hbm [shape: f32[16,16], index: 2, kind: input, shape index: {}]   ;;  %s1305_s3 = inlined_call_operand.vmem [shape: f32[16,1], index: 3, kind: output, shape index: {}]  }
   0x1   :  { %1312 = sst [smem:[#allocation17_spill]] %s1303_s1 }
   0x2   :  { %1313 = sst [smem:[#allocation18_spill]] %s1304_s2 }
   0x3   :  { %1314 = sst [smem:[#allocation19_spill]] %s1305_s3 }
   0x4   :  { %8 = vsyncpa [#allocation4], 0 }
   0x5   :  { %10 = vsyncpa [#allocation4 + $0x1], 0 }
   0x6   :  { %11 = vsyncpa [#allocation6], 0 }
   0x7   :  { %13 = vsyncpa [#allocation6 + $0x1], 0  ;;  %s1026_s12 = smov 0   ;;  %s1028_s13 = smov 0  }
   0x8   :  { %s1030_s14 = smov 0   ;;  %s1032_s15 = smov 0  }
   0x9   :  { %s1034_s16 = smov 0   ;;  %s1036_s17 = smov 0  }
   0xa   :  { %s1038_s18 = smov 0   ;;  %s1040_s19 = smov 0  }
   0xb   :  { %s1042_s20 = smov 0   ;;  %s1044_s21 = smov 0  }
   0xc   :  { %s1046_s22 = smov 0  }
   0xd LB: > { %1315 = sst [smem:[#allocation10_spill]] %s968_s14  ;;  %s1306_s23 = sadd.s32 4294967295, %s1000_s22   ;;  %s1000_s22 = sphi %s1046_s22, %s19_s22   ;;  %s996_s21 = sphi %s1044_s21, %s1349_s21   ;;  %s992_s20 = sphi %s1042_s20, %s1348_s20   ;;  %s988_s19 = sphi %s1040_s19, %s1347_s19   ;;  %s984_s18 = sphi %s1038_s18, %s1346_s18   ;;  %s980_s17 = sphi %s1036_s17, %s1339_s17   ;;  %s976_s16 = sphi %s1034_s16, %s1345_s16   ;;  %s972_s15 = sphi %s1032_s15, %s1344_s15   ;;  %s968_s14 = sphi %s1030_s14, %s1337_s14   ;;  %s964_s13 = sphi %s1028_s13, %s1343_s13   ;;  %s960_s12 = sphi %s1026_s12, %s1342_s12  }
   0xe   : > { %1316 = sst [smem:[#allocation11_spill]] %s980_s17  ;;  %s28_s24 = sadd.s32 1, %s992_s20 }
   0xf   : > { %1317 = sst [smem:[#allocation12_spill]] %s984_s18  ;;  %p29_p0 = scmp.ge.s32.totalorder %s28_s24, 4 }
  0x10   : > { %s31_s25 = sadd.s32 1, %s996_s21  ;;  %s40_s26 = sadd.s32 1, %s980_s17 }
  0x11   : > { %p47_p1 = scmp.ne.s32.totalorder %s980_s17, %s976_s16  ;;  %s1351_s24 = smov (%p29_p0, %s28_s24), 0 }
  0x12   : > { %1318 = sst [smem:[#allocation13_spill]] %s1351_s24  ;;  %s1353_s25 = smov (!%p29_p0, %s31_s25), %s996_s21 }
  0x13   : > { %s36_s27 = ssub.s32 %s992_s20, %s1351_s24  ;;  %p48_p2 = scmp.eq.s32.totalorder %s1000_s22, 0 }
  0x14   : > { %p33_p3 = scmp.ge.s32.totalorder %s1353_s25, 2  ;;  %p53_p4 = scmp.ne.s32.totalorder %s976_s16, %s972_s15 }
  0x15   : > { %p1094_p5 = por %p48_p2, %p47_p1  ;;  %p1100_p6 = scmp.eq.s32.totalorder %s1306_s23, 0 }
  0x16   : > { %s1355_s25 = smov (%p33_p3, %s1353_s25), 0  ;;  %s66_s4 = sadd.s32 1, %s968_s14 }
  0x17   : > { %1321 = sst [smem:[#allocation14_spill]] %s1355_s25  ;;  %p1108_p7 = por %p1100_p6, %p53_p4 }
  0x18   : > { %s35_s5 = ssub.s32 %s996_s21, %s1355_s25  ;;  %p73_p8 = scmp.ne.s32.totalorder %s968_s14, %s964_s13 }
  0x19   : > { %s37_s6 = sor.u32 %s36_s27, %s35_s5  ;;  %p64_p9 = scmp.eq.s32.totalorder %s35_s5, 0 }
  0x1a   : > { %p38_p10 = scmp.eq.s32.totalorder %s37_s6, 0  ;;  %p1119_p11 = por %p73_p8, %p48_p2 }
  0x1b   : > { %s1124_s8 = scalar_select %p64_p9, %s968_s14, %s66_s4  }
  0x1c   : > { %s1127_s9 = scalar_select %p38_p10, %s980_s17, %s40_s26  }
  0x1d   : > { %1324 = sst [smem:[#allocation15_spill]] %s1124_s8  ;;  %p79_p12 = scmp.ne.s32.totalorder %s964_s13, %s960_s12 }
  0x1e   : > { %1325 = sst [smem:[#allocation16_spill]] %s1127_s9  ;;  %p712_p13 = scmp.lt.s32.totalorder %s1000_s22, 8 }
  0x1f   : > { %s179_s10 = sand.u32 1, %s1000_s22   ;;  %p1135_p0 = por %p79_p12, %p1100_p6 }
  0x20   : > { %p1143_p1 = pnand %p712_p13, %p1094_p5  ;;  %s181_s27 = sand.u32 1, %s968_s14  }
  0x21   : > { %s1148_s26 = sshll.u32 %s181_s27, 3  ;;  %s682_s12 = sshll.u32 %s996_s21, 3 }
  0x22   : > { %s1328_s1 = sld [smem:[#allocation17_spill]]  ;;  %s183_s6 = scalar_lea.vmem [#allocation5], %s1148_s26 }
  0x23   : > { %s191_s28 = sshll.u32 %s183_s6, 4  ;;  %p1159_p2 = pnand %p712_p13, %p1119_p11  ;;  %s192_s28 = int_to_ptr.vmem [resolvable:$true] %s191_s28 }
  0x24   : > { %s1330_s2 = sld [smem:[#allocation18_spill]]  ;;  %p685_p3 = scmp.ge.s32.totalorder %s1000_s22, 1 }
  0x25   : > { %s180_s4 = scalar_lea.sflag [#allocation6], %s179_s10  ;;  %p215_p4 = scmp.lt.s32.totalorder %s1000_s22, 9 }
  0x26   : > { %s155_s7 = sand.u32 1, %s980_s17   ;;  %s1002_s18 = smov 512  }
  0x27   : > { %p1170_p5 = pnand %p685_p3, %p215_p4  ;;  %s677_s6 = sshll.u32 %s155_s7, 7 }
  0x28   : > { %s187_s5 = scalar_lea.hbm %s1328_s1, %s682_s12  ;;  %s159_s14 = scalar_lea.vmem [#allocation3], %s677_s6 }
  0x29   : > { %s189_s23 = sshll.u32 %s187_s5, 4  ;;  %s695_s5 = sshll.u32 %s996_s21, 6  ;;  %s190_s23 = int_to_ptr.hbm [resolvable:$true] %s189_s23 }
  0x2a   : > { %s206_s9 = scalar_lea.hbm %s1330_s2, %s682_s12  ;;  %s164_s1 = sadd.s32 %s992_s20, %s695_s5 }
  0x2b   : > { %708 = dma.hbm_to_vmem [thread:$0]  (!%p1159_p2), %s190_s23, 128, %s192_s28, %s180_s4  }
  0x2c   : > { %s680_s8 = sshll.u32 %s164_s1, 3  ;;  %s169_s24 = sshll.u32 %s159_s14, 4  ;;  %s170_s24 = int_to_ptr.vmem [resolvable:$true] %s169_s24 }
  0x2d   : > { %s166_s10 = scalar_lea.hbm %s1302_s0, %s680_s8  ;;  %s208_s28 = sshll.u32 %s206_s9, 4  ;;  %s209_s28 = int_to_ptr.hbm [resolvable:$true] %s208_s28 }
  0x2e   : > { %s167_s23 = sshll.u32 %s166_s10, 4  ;;  %s156_s2 = scalar_lea.sflag [#allocation4], %s155_s7  ;;  %s168_s23 = int_to_ptr.hbm [resolvable:$true] %s167_s23 }
  0x2f   : > { %s1003_s17 = smov 128   ;;  %s1004_s3 = smov 8  }
  0x30   : > { %705 = dma.hbm_to_vmem [thread:$0]  (!%p1143_p1), %s168_s23, 2048, %s170_s24, %s156_s2, %s1002_s18, %s1003_s17, %s1004_s3  }
  0x31   : > { %s202_s5 = scalar_lea.vmem [#allocation7], %s1148_s26  ;;  %219 = sbr.rel (%p1170_p5) target bundleno = 526 (0x20e), region = 32 }
  0x32   : > { %s210_s1 = sshll.u32 %s202_s5, 4  ;;  %s221_s14 = sand.u32 (!%p1170_p5), 1, %s976_s16   ;;  %s211_s1 = int_to_ptr.vmem [resolvable:$true] %s210_s1 }
  0x33   : > { %711 = dma.hbm_to_vmem [thread:$0]  (!%p1159_p2), %s209_s28, 128, %s211_s1, %s180_s4  }
  0x34   : > { %s686_s8 = sshll.u32 (!%p1170_p5), %s221_s14, 7  ;;  %s222_s9 = scalar_lea.sflag (!%p1170_p5), [#allocation4], %s221_s14 }
  0x35   : > { %s1188_s7 = scalar_lea.vmem (!%p1170_p5), [#allocation3], %s686_s8 }
  0x36   : > { %951 = dma.done.wait (%p1108_p7), %s222_s9, 2048  }
  0x37   : > { %953 = vsyncadd (%p1108_p7), %s222_s9, 4294965248  ;;  %s1332_s2 = sadd.s32 4294967295, %s1000_s22   ;;  %s233_s17 = sand.u32 1, %s964_s13  }
  0x38   : > { %s231_s3 = sand.u32 1, %s1332_s2   ;;  %s1197_s18 = sshll.u32 %s233_s17, 3 }
  0x39   : > { %s232_s25 = scalar_lea.sflag [#allocation6], %s231_s3  ;;  %s235_s15 = scalar_lea.vmem [#allocation5], %s1197_s18 }
  0x3a   : > { %955 = dma.done.wait (%p1135_p0), %s232_s25, 256  }
  0x3b   : > { %957 = vsyncadd (%p1135_p0), %s232_s25, 4294967040  ;;  %p279_p6 = scmp.lt.s32.totalorder %s988_s19, 1  ;;  %s1333_s29 = sld [smem:[#allocation19_spill]] }
  0x3c   : > { %s245_s24 = scalar_lea.vmem [#allocation7], %s1197_s18  ;;  %s1334_s12 = sld [smem:[#allocation12_spill]] }
  0x3d   : > { %s1357_s19 = smov (!%p279_p6, %s988_s19), 1 }
  0x3e   : > { %s689_s30 = sshll.u32 %s1357_s19, 3 }
  0x41   : > { %s1209_s6 = scalar_lea.vmem %s1333_s29, %s689_s30 }
  0x42   : > { %p690_p7 = scmp.ne.s32.totalorder %s1334_s12, 0 }
  0x44   : > { %286 = sbr.rel (%p690_p7) target bundleno = 75 (0x4b), region = 48 }
  0x49   : > { %vm287_vm0 = vcmask 130048   ;;  %v1005_v0 = vmov 0.0  }
  0x4a   : > { %288 = vst.msk [vmem:[#allocation2] sm:$0xff] %vm287_vm0, %v1005_v0 }
  0x4b PF: > { %v309_v1 = vlaneseq  ;;  %s1335_s11 = sld [smem:[#allocation12_spill]]  ;;  %v305_v2 = vld [vmem:[%s235_s15] sm:$0xff]  ;;  %v291_v18 = vld [vmem:[%s1188_s7 + $0x10] sm:$0xff]  ;;  %v296_v33 = vld [vmem:[%s1188_s7 + $0x38] sm:$0xff] }
  0x4c   : > { %v289_v20 = vld [vmem:[%s1188_s7] sm:$0xff]  ;;  %v299_v30 = vld [vmem:[%s1188_s7 + $0x50] sm:$0xff]  ;;  %v290_v35 = vld [vmem:[%s1188_s7 + $0x8] sm:$0xff] }
  0x4d   : > { %v313_v4 = vshrl.u32 %v309_v1, 7  ;;  %v1214_v17 = vand.u32 127, %v309_v1  ;;  %v293_v25 = vld [vmem:[%s1188_s7 + $0x20] sm:$0xff]  ;;  %v295_v39 = vld [vmem:[%s1188_s7 + $0x30] sm:$0xff]  ;;  %v292_v41 = vld [vmem:[%s1188_s7 + $0x18] sm:$0xff] }
  0x4e   : > { %v297_v26 = vld [vmem:[%s1188_s7 + $0x40] sm:$0xff]  ;;  %v302_v42 = vld [vmem:[%s1188_s7 + $0x68] sm:$0xff]  ;;  %v304_v56 = vld [vmem:[%s1188_s7 + $0x78] sm:$0xff] }
  0x4f   : > { %807 = vset.pattern.permute.xlu2 %v313_v4  ;;  %806 = vset.pattern.permute.xlu1 %v313_v4  ;;  %v320_v9 = vadd.s32 8, %v313_v4  ;;  %v301_v48 = vld [vmem:[%s1188_s7 + $0x60] sm:$0xff]  ;;  %v294_v50 = vld [vmem:[%s1188_s7 + $0x28] sm:$0xff]  ;;  %v300_v57 = vld [vmem:[%s1188_s7 + $0x58] sm:$0xff] }
  0x50   : > { %805 = vset.pattern.permute.xlu0 %v313_v4  ;;  %v298_v52 = vld [vmem:[%s1188_s7 + $0x48] sm:$0xff]  ;;  %v303_v61 = vld [vmem:[%s1188_s7 + $0x70] sm:$0xff] }
  0x51   : > { %s691_s27 = sshll.u32 %s1335_s11, 7  ;;  %p692_p8 = scmp.ne.s32.totalorder %s1335_s11, 3 }
  0x52   : > { %v307_v3 = vstv %s691_s27 }
  0x53   : > { %v308_v5 = vsub.s32 %v305_v2, %v307_v3 }
  0x55   : > { %v337_v6 = vperm.slane %v308_v5, 2  ;;  %v324_v7 = vperm.slane %v308_v5, 1  ;;  %v311_v8 = vperm.slane %v308_v5, 0  ;;  %v363_v10 = vperm.slane %v308_v5, 4 }
  0x56   : > { %v350_v11 = vperm.slane %v308_v5, 3  ;;  %v389_v12 = vperm.slane %v308_v5, 6  ;;  %v376_v13 = vperm.slane %v308_v5, 5  ;;  %v402_v14 = vperm.slane %v308_v5, 7 }
  0x57   : > { %342 = vperm.xlu2 %807, %v337_v6   ;;  %329 = vperm.xlu1 %806, %v324_v7  }
  0x58   : > { %316 = vperm.xlu0 %805, %v311_v8  }
  0x5f   : > { %810 = vset.pattern.permute.xlu2 %v320_v9  ;;  %808 = vset.pattern.permute.xlu1 %v320_v9 }
  0x60   : > { %368 = vperm.xlu0 %805, %v363_v10  }
  0x67   : > { %348 = vperm.xlu2 %810, %v337_v6   ;;  %335 = vperm.xlu1 %808, %v324_v7  }
  0x68   : > { %811 = vset.pattern.permute.xlu0 %v320_v9 }
  0x6f   : > { %361 = vperm.xlu2 %810, %v350_v11   ;;  %809 = vset.pattern.permute.xlu1 %v313_v4 }
  0x70   : > { %322 = vperm.xlu0 %811, %v311_v8  }
  0x77   : > { %813 = vset.pattern.permute.xlu2 %v313_v4  ;;  %355 = vperm.xlu1 %809, %v350_v11  }
  0x78   : > { %400 = vperm.xlu0 %811, %v389_v12  }
  0x7f   : > { %381 = vperm.xlu2 %813, %v376_v13   ;;  %812 = vset.pattern.permute.xlu1 %v320_v9 }
  0x87   : > { %374 = vperm.xlu1 %812, %v363_v10   ;;  %394 = vperm.xlu2 %813, %v389_v12   ;;  %v497_v10 = vadd.s32 4294967288, %v1214_v17 }
  0x8f   : > { %387 = vperm.xlu1 %812, %v376_v13   ;;  %815 = vset.pattern.permute.xlu2 %v320_v9 }
  0x97   : > { %814 = vset.pattern.permute.xlu1 %v313_v4  ;;  %413 = vperm.xlu2 %815, %v402_v14  }
  0x9f   : > { %407 = vperm.xlu1 %814, %v402_v14  }
  0xb1   : > { %v343_v15 = vpop.permute.xlu2 %342 }
  0xb2   : > { %vm419_vm3 = vcmp.eq.s32.totalorder %v1214_v17, %v343_v15 }
  0xb3   : > { %v435_v27 = vsel %vm419_vm3, %v293_v25, 0.0  ;;  %vm524_vm3 = vcmask 1042434  }
  0xc1   : > { %v349_v16 = vpop.permute.xlu2 %348 }
  0xc2   : > { %vm420_vm12 = vcmp.eq.s32.totalorder %v1214_v17, %v349_v16 }
  0xc3   : > { %v436_v51 = vsel %vm420_vm12, %v294_v50, 0.0 }
  0xc9   : > { %v330_v19 = vpop.permute.xlu1 %329  ;;  %v362_v24 = vpop.permute.xlu2 %361 }
  0xca   : > { %vm417_vm1 = vcmp.eq.s32.totalorder %v1214_v17, %v330_v19  ;;  %v317_v21 = vpop.permute.xlu0 %316  ;;  %vm422_vm6 = vcmp.eq.s32.totalorder %v1214_v17, %v362_v24 }
  0xcb   : > { %vm415_vm2 = vcmp.eq.s32.totalorder %v1214_v17, %v317_v21  ;;  %v433_v22 = vsel %vm417_vm1, %v291_v18, 0.0  ;;  %v438_v37 = vsel %vm422_vm6, %v296_v33, 0.0  ;;  %vm499_vm1 = vcmask 130112  }
  0xcc   : > { %451 = vadd.xlane.f32.xlu0 %v433_v22  ;;  %v431_v23 = vsel %vm415_vm2, %v289_v20, 0.0  ;;  %vm522_vm2 = vcmask 1041409   ;;  %vm530_vm6 = vcmask 1045509  }
  0xcd   : > { %447 = vadd.xlane.f32.xlu1 %v431_v23 }
  0xd2   : > { %v369_v28 = vpop.permute.xlu0 %368 }
  0xd3   : > { %vm423_vm4 = vcmp.eq.s32.totalorder %v1214_v17, %v369_v28 }
  0xd4   : > { %v439_v29 = vsel %vm423_vm4, %v297_v26, 0.0  ;;  %vm526_vm4 = vcmask 1043459  }
  0xd5   : > { %455 = vadd.xlane.f32.xlu1 %v435_v27  ;;  %463 = vadd.xlane.f32.xlu2 %v439_v29 }
  0xd9   : > { %v382_v31 = vpop.permute.xlu2 %381  ;;  %v336_v34 = vpop.permute.xlu1 %335 }
  0xda   : > { %vm425_vm5 = vcmp.eq.s32.totalorder %v1214_v17, %v382_v31  ;;  %vm418_vm8 = vcmp.eq.s32.totalorder %v1214_v17, %v336_v34 }
  0xdb   : > { %v441_v32 = vsel %vm425_vm5, %v299_v30, 0.0  ;;  %v434_v46 = vsel %vm418_vm8, %v292_v41, 0.0  ;;  %vm528_vm5 = vcmask 1044484   ;;  %vm534_vm8 = vcmask 1047559  }
  0xdd   : > { %467 = vadd.xlane.f32.xlu1 %v441_v32 }
  0xe1   : > { %v395_v45 = vpop.permute.xlu2 %394 }
  0xe2   : > { %v323_v36 = vpop.permute.xlu0 %322  ;;  %vm427_vm11 = vcmp.eq.s32.totalorder %v1214_v17, %v395_v45 }
  0xe3   : > { %vm416_vm7 = vcmp.eq.s32.totalorder %v1214_v17, %v323_v36  ;;  %v443_v49 = vsel %vm427_vm11, %v301_v48, 0.0 }
  0xe4   : > { %v432_v38 = vsel %vm416_vm7, %v290_v35, 0.0  ;;  %vm532_vm7 = vcmask 1046534  }
  0xe5   : > { %449 = vadd.xlane.f32.xlu2 %v432_v38  ;;  %461 = vadd.xlane.f32.xlu1 %v438_v37 }
  0xe9   : > { %v356_v40 = vpop.permute.xlu1 %355 }
  0xea   : > { %vm421_vm9 = vcmp.eq.s32.totalorder %v1214_v17, %v356_v40  ;;  %v401_v43 = vpop.permute.xlu0 %400 }
  0xeb   : > { %v437_v44 = vsel %vm421_vm9, %v295_v39, 0.0  ;;  %vm428_vm10 = vcmp.eq.s32.totalorder %v1214_v17, %v401_v43  ;;  %vm538_vm9 = vcmask 130048  }
  0xec   : > { %459 = vadd.xlane.f32.xlu0 %v437_v44  ;;  %v444_v47 = vsel %vm428_vm10, %v302_v42, 0.0 }
  0xed   : > { %453 = vadd.xlane.f32.xlu2 %v434_v46  ;;  %473 = vadd.xlane.f32.xlu1 %v444_v47  ;;  %v479_v46 = vld [vmem:[#allocation2] sm:$0xff] }
  0xf1   : > { %v414_v55 = vpop.permute.xlu2 %413 }
  0xf2   : > { %vm430_vm14 = vcmp.eq.s32.totalorder %v1214_v17, %v414_v55 }
  0xf3   : > { %v446_v59 = vsel %vm430_vm14, %v304_v56, 0.0 }
  0xf4   : > { %471 = vadd.xlane.f32.xlu0 %v443_v49 }
  0xf5   : > { %457 = vadd.xlane.f32.xlu2 %v436_v51 }
  0xf9   : > { %v375_v53 = vpop.permute.xlu1 %374 }
  0xfa   : > { %vm424_vm13 = vcmp.eq.s32.totalorder %v1214_v17, %v375_v53 }
  0xfb   : > { %v440_v54 = vsel %vm424_vm13, %v298_v52, 0.0 }
  0xfc   : > { %465 = vadd.xlane.f32.xlu0 %v440_v54 }
 0x101   : > { %v388_v58 = vpop.permute.xlu1 %387 }
 0x102   : > { %vm426_vm15 = vcmp.eq.s32.totalorder %v1214_v17, %v388_v58 }
 0x103   : > { %v442_v60 = vsel %vm426_vm15, %v300_v57, 0.0 }
 0x104   : > { %469 = vadd.xlane.f32.xlu2 %v442_v60  ;;  %477 = vadd.xlane.f32.xlu0 %v446_v59 }
 0x111   : > { %v408_v62 = vpop.permute.xlu1 %407 }
 0x112   : > { %vm429_vm0 = vcmp.eq.s32.totalorder %v1214_v17, %v408_v62 }
 0x113   : > { %v445_v63 = vsel %vm429_vm0, %v303_v61, 0.0 }
 0x114   : > { %475 = vadd.xlane.f32.xlu2 %v445_v63 }
 0x13f   : > { %v452_v2 = vpop.xlane.xlu0 %451 }
 0x140   : > { %v448_v1 = vpop.xlane.xlu1 %447  ;;  %v501_v15 = vperm.slane %v452_v2, %v1214_v17 }
 0x141   : > { %v496_v20 = vperm.slane %v448_v1, %v1214_v17 }
 0x148   : > { %v464_v0 = vpop.xlane.xlu2 %463  ;;  %v456_v4 = vpop.xlane.xlu1 %455 }
 0x149   : > { %v504_v18 = vperm.slane %v456_v4, %v1214_v17  ;;  %v510_v27 = vperm.slane %v464_v0, %v1214_v17 }
 0x150   : > { %v468_v7 = vpop.xlane.xlu1 %467 }
 0x151   : > { %v513_v29 = vperm.slane %v468_v7, %v1214_v17 }
 0x158   : > { %v450_v3 = vpop.xlane.xlu2 %449  ;;  %v462_v11 = vpop.xlane.xlu1 %461 }
 0x159   : > { %v498_v16 = vperm.slane %v450_v3, %v497_v10  ;;  %v508_v30 = vperm.slane %v462_v11, %v497_v10 }
 0x15b   : > { %v500_v24 = vsel %vm499_vm1, %v498_v16, %v496_v20 }
 0x15f   : > { %v460_v5 = vpop.xlane.xlu0 %459 }
 0x160   : > { %v454_v6 = vpop.xlane.xlu2 %453  ;;  %v507_v25 = vperm.slane %v460_v5, %v1214_v17  ;;  %v474_v32 = vpop.xlane.xlu1 %473 }
 0x161   : > { %v502_v12 = vperm.slane %v454_v6, %v497_v10  ;;  %v517_v38 = vperm.slane %v474_v32, %v497_v10 }
 0x162   : > { %v509_v35 = vsel %vm499_vm1, %v508_v30, %v507_v25 }
 0x163   : > { %v503_v21 = vsel %vm499_vm1, %v502_v12, %v501_v15 }
 0x164   : > { %v523_v28 = vsel %vm522_vm2, %v503_v21, %v500_v24 }
 0x167   : > { %v472_v8 = vpop.xlane.xlu0 %471 }
 0x168   : > { %v458_v9 = vpop.xlane.xlu2 %457  ;;  %v516_v37 = vperm.slane %v472_v8, %v1214_v17 }
 0x169   : > { %v505_v13 = vperm.slane %v458_v9, %v497_v10 }
 0x16a   : > { %v518_v45 = vsel %vm499_vm1, %v517_v38, %v516_v37 }
 0x16b   : > { %v506_v22 = vsel %vm499_vm1, %v505_v13, %v504_v18 }
 0x16c   : > { %v525_v31 = vsel %vm524_vm3, %v506_v22, %v523_v28 }
 0x16d   : > { %v527_v39 = vsel %vm526_vm4, %v509_v35, %v525_v31 }
 0x16f   : > { %v466_v14 = vpop.xlane.xlu0 %465 }
 0x170   : > { %v511_v23 = vperm.slane %v466_v14, %v497_v10 }
 0x172   : > { %v512_v33 = vsel %vm499_vm1, %v511_v23, %v510_v27 }
 0x173   : > { %v529_v40 = vsel %vm528_vm5, %v512_v33, %v527_v39 }
 0x177   : > { %v470_v19 = vpop.xlane.xlu2 %469  ;;  %v478_v34 = vpop.xlane.xlu0 %477 }
 0x178   : > { %v514_v26 = vperm.slane %v470_v19, %v497_v10  ;;  %v520_v41 = vperm.slane %v478_v34, %v497_v10 }
 0x17a   : > { %v515_v36 = vsel %vm499_vm1, %v514_v26, %v513_v29 }
 0x17b   : > { %v531_v42 = vsel %vm530_vm6, %v515_v36, %v529_v40 }
 0x17c   : > { %v533_v48 = vsel %vm532_vm7, %v518_v45, %v531_v42 }
 0x187   : > { %v476_v43 = vpop.xlane.xlu2 %475 }
 0x188   : > { %v519_v44 = vperm.slane %v476_v43, %v1214_v17 }
 0x18a   : > { %v521_v47 = vsel %vm499_vm1, %v520_v41, %v519_v44  ;;  %543 = sbr.rel (%p692_p8) target bundleno = 526 (0x20e), region = 52 }
 0x18b   : > { %v535_v49 = vsel %vm534_vm8, %v521_v47, %v533_v48 }
 0x18c   : > { %v537_v50 = vadd.f32 %v535_v49, %v479_v46 }
 0x18e   : > { %539 = vst.msk [vmem:[#allocation2] sm:$0xff] %vm538_vm9, %v537_v50 }
 0x18f   : > { %v545_v52 = vld [vmem:[%s245_s24] sm:$0xff]  ;;  %vm550_vm10 = vcmask 7168  }
 0x195   : > { %v544_v51 = vld [vmem:[#allocation2] sm:$0xff] }
 0x196   : > { %v546_v53 = vmul.f32 %v545_v52, %v544_v51 }
 0x198   : > { %v547_v17 = vsel %vm538_vm9, %v546_v53, 0.0 }
 0x199   : > { %548 = vadd.xlane.f32.xlu0 %v547_v17 }
 0x20c   : > { %v549_v54 = vpop.xlane.xlu0 %548 }
 0x20d   : > { %551 = vst.msk [vmem:[%s1209_s6] sm:$0xff] %vm550_vm10, %v549_v54 }
 0x20e PF: > { %s19_s22 = sadd.s32 1, %s1000_s22   ;;  %s1336_s19 = sld [smem:[#allocation10_spill]] }
 0x20f   : > { %p16_p9 = scmp.ge.s32.totalorder %s19_s22, 10   ;;  %s1337_s14 = sld [smem:[#allocation15_spill]] }
 0x210   : > { %s1338_s10 = sld [smem:[#allocation11_spill]]  ;;  %s1342_s12 = smov %s964_s13 }
 0x211   : > { %s1339_s17 = sld [smem:[#allocation16_spill]]  ;;  %s1344_s15 = smov %s976_s16 }
 0x212   : > { %s1340_s23 = sld [smem:[#allocation13_spill]]  ;;  %s1346_s18 = smov %s992_s20 }
 0x213   : > { %s1341_s28 = sld [smem:[#allocation14_spill]] }
 0x214   : > { %s1343_s13 = smov %s1336_s19  ;;  %s1347_s19 = smov %s996_s21 }
 0x215   :  { %18 = sbr.rel (!%p16_p9) target bundleno = 13 (0xd), region = 104 }
 0x216   : > { %s1345_s16 = smov %s1338_s10 }
 0x218   : > { %s1348_s20 = smov %s1340_s23 }
 0x219   : > { %s1349_s21 = smov %s1341_s28 }
 0x21a   :  { %571 = vsyncpa [#allocation4], 1 }
 0x21b   :  { %573 = vsyncpa [#allocation4 + $0x1], 1 }
 0x21c   :  { %574 = vsyncpa [#allocation6], 1 }
 0x21d   :  { %576 = vsyncpa [#allocation6 + $0x1], 1 }

</bundles_post_ra>
